<compile_context>
chip_gen: v7x
topology: tpu7x:2x2x1
jax: 0.10.0
libtpu: 0.0.40
codegen_flags: <defaults>
</compile_context>

<pallas_src>
import functools

import jax
import jax.numpy as jnp
from jax.experimental import pallas as pl
from jax.experimental.pallas import tpu as pltpu


def _pick_tile(dim, candidates):
    """Largest candidate that evenly divides `dim`; fall back to the full dim."""
    for c in candidates:
        if dim % c == 0:
            return c
    # TODO(synk): pad the token / ffn dimension for irregular production sizes instead of
    # falling back to a whole-array block.
    return dim


# ---------------- router kernel: probs = softmax(x @ Wr), tiled over tokens ----------------
def _router_kernel(x_ref, wr_ref, probs_ref):
    logits = jnp.dot(x_ref[...], wr_ref[...], preferred_element_type=jnp.float32)
    m = jnp.max(logits, axis=-1, keepdims=True)
    ex = jnp.exp(logits - m)
    probs_ref[...] = ex / jnp.sum(ex, axis=-1, keepdims=True)


def router_probs(x2d, w_router, tm):
    T, H = x2d.shape
    E = w_router.shape[1]
    return pl.pallas_call(
        _router_kernel,
        out_shape=jax.ShapeDtypeStruct((T, E), jnp.float32),
        grid=(T // tm,),
        in_specs=[
            pl.BlockSpec((tm, H), lambda i: (i, 0)),
            pl.BlockSpec((H, E), lambda i: (0, 0)),
        ],
        out_specs=pl.BlockSpec((tm, E), lambda i: (i, 0)),
        compiler_params=pltpu.CompilerParams(dimension_semantics=("parallel",)),
    )(x2d, w_router)


# ---------------- expert MLP kernel ----------------
# grid = (token_tiles, E, ffn_tiles); E and F are reduction axes (accumulator resident).
def _moe_expert_kernel(mask_ref, x_ref, w1_ref, w2_ref, gate_ref, out_ref, acc_ref):
    i = pl.program_id(0)
    e = pl.program_id(1)
    f = pl.program_id(2)
    last_e = pl.num_programs(1) - 1
    last_f = pl.num_programs(2) - 1

    @pl.when(jnp.logical_and(e == 0, f == 0))
    def _init():
        acc_ref[...] = jnp.zeros_like(acc_ref)

    # Skip the whole tile if no token in this token-tile routes to expert e.
    @pl.when(mask_ref[i, e] != 0)
    def _compute():
        x = x_ref[...]                                                   # (TM, H) bf16
        h = jnp.dot(x, w1_ref[...], preferred_element_type=jnp.float32)  # (TM, TF) f32
        # NOTE: megablocks' default activation is tanh-approximate GELU; exact-erf GELU
        # would need lax.erf inside the kernel (small numerical difference accepted).
        h = jax.nn.gelu(h, approximate=True)
        y = jnp.dot(h.astype(w2_ref.dtype), w2_ref[...],
                    preferred_element_type=jnp.float32)                  # (TM, H) f32
        acc_ref[...] += gate_ref[...] * y                                # gate: (TM, 1) f32

    @pl.when(jnp.logical_and(e == last_e, f == last_f))
    def _finalize():
        out_ref[...] = acc_ref[...].astype(out_ref.dtype)


def dropless_moe_experts(x2d, gates_e_t1, tile_mask, w1, w2, out_dtype, tm, tf):
    T, H = x2d.shape
    E, _, F = w1.shape
    n_t = T // tm
    n_f = F // tf

    grid_spec = pltpu.PrefetchScalarGridSpec(
        num_scalar_prefetch=1,                    # tile_mask -> SMEM
        grid=(n_t, E, n_f),
        in_specs=[
            # token tile (resident across the reduction axes)
            pl.BlockSpec((tm, H), lambda i, e, f, mask: (i, 0)),
            # expert e's W1 F-tile: kernel sees (H, TF)
            pl.BlockSpec((None, H, tf), lambda i, e, f, mask: (e, 0, f)),
            # expert e's W2 F-tile: kernel sees (TF, H)
            pl.BlockSpec((None, tf, H), lambda i, e, f, mask: (e, f, 0)),
            # gate column for (expert e, token tile i): kernel sees (TM, 1)
            pl.BlockSpec((None, tm, 1), lambda i, e, f, mask: (e, i, 0)),
        ],
        out_specs=pl.BlockSpec((tm, H), lambda i, e, f, mask: (i, 0)),
        scratch_shapes=[pltpu.VMEM((tm, H), jnp.float32)],
    )
    return pl.pallas_call(
        _moe_expert_kernel,
        out_shape=jax.ShapeDtypeStruct((T, H), out_dtype),
        grid_spec=grid_spec,
        compiler_params=pltpu.CompilerParams(
            dimension_semantics=("parallel", "arbitrary", "arbitrary"),
            vmem_limit_bytes=48 * 1024 * 1024,
        ),
    )(tile_mask, x2d, w1, w2, gates_e_t1)


# ---------------- full forward ----------------
def parallel_dropless_moe_forward(x, w_router, w1, w2, top_k):
    """x: [sl, bs, hs].  Returns (output [sl, bs, hs] in x.dtype, None)."""
    sl, bs, hs = x.shape
    in_dtype = x.dtype
    x2d = x.reshape(-1, hs)                                   # [T, H]
    T = x2d.shape[0]
    E = w_router.shape[1]
    F = w1.shape[2]

    tm = _pick_tile(T, (512, 256, 128))
    tf = _pick_tile(F, (2048, 1024, 512, 256, 128))
    n_t = T // tm

    # TopKTokenChoiceRouter: softmax probs (f32 for routing parity), then top-k.
    probs = router_probs(x2d.astype(jnp.float32), w_router.astype(jnp.float32), tm)
    expert_weights, expert_indices = jax.lax.top_k(probs, top_k)       # [T, k]

    # TODO(synk): megablocks.ops.sort/histogram/gather/scatter token permutation has no clean
    # Pallas equivalent; replaced by the mathematically identical dense-gate accumulation with
    # per-(token-tile, expert) skip masks.
    gates = jnp.zeros((T, E), jnp.float32).at[
        jnp.arange(T)[:, None], expert_indices
    ].add(expert_weights)                                              # [T, E]
    gates_e_t1 = gates.T.reshape(E, T, 1)                              # lane-cheap gate columns

    # Per-(token-tile, expert) usage mask so the kernel can skip unused experts.
    tile_ids = jnp.arange(T, dtype=jnp.int32) // tm                    # [T]
    counts = jnp.zeros((n_t, E), jnp.int32).at[
        jnp.broadcast_to(tile_ids[:, None], (T, top_k)), expert_indices
    ].add(1)
    tile_mask = (counts > 0).astype(jnp.int32)                         # [n_t, E]

    out2d = dropless_moe_experts(
        x2d.astype(jnp.bfloat16),
        gates_e_t1,
        tile_mask,
        w1.astype(jnp.bfloat16),
        w2.astype(jnp.bfloat16),
        in_dtype,
        tm,
        tf,
    )
    return out2d.reshape(sl, bs, hs), None


if __name__ == "__main__":
    sl, bs, hs, ffn = 8, 2, 32, 64
    num_experts, top_k = 8, 2

    key = jax.random.PRNGKey(0)
    k1, k2, k3, k4 = jax.random.split(key, 4)
    x = jax.random.normal(k1, (sl, bs, hs), dtype=jnp.float32)
    w_router = 0.02 * jax.random.normal(k2, (hs, num_experts), dtype=jnp.float32)
    w1 = 0.02 * jax.random.normal(k3, (num_experts, hs, ffn), dtype=jnp.float32)
    w2 = 0.02 * jax.random.normal(k4, (num_experts, ffn, hs), dtype=jnp.float32)

    fwd = jax.jit(functools.partial(parallel_dropless_moe_forward, top_k=top_k))
    out, aux = fwd(x, w_router, w1, w2)
    jax.block_until_ready(out)
    assert out.shape == (sl, bs, hs) and aux is None
    assert bool(jnp.all(jnp.isfinite(out)))
    print("KERNEL_OK")
</pallas_src>

<mosaic_0001>
module attributes {stable_mosaic.version = 11 : i64} {
  func.func private @main(%arg0: i32) attributes {dimension_semantics = [#tpu.dimension_semantics<core_parallel>], iteration_bounds = array<i64: 2>, tpu.core_type = #tpu.core_type<sc_scalar_subcore>, window_params = []} {
    return
  }
}

module attributes {stable_mosaic.version = 11 : i64} {
  func.func private @main(%arg0: i32) attributes {dimension_semantics = [#tpu.dimension_semantics<core_parallel>], iteration_bounds = array<i64: 2>, tpu.core_type = #tpu.core_type<sc_scalar_subcore>, window_params = []} {
    return
  }
}

module attributes {stable_mosaic.version = 11 : i64} {
  func.func @_router_kernel(%arg0: i32, %arg1: memref<16x32xf32, #tpu.memory_space<vmem>>, %arg2: memref<32x8xf32, #tpu.memory_space<vmem>>, %arg3: memref<16x8xf32, #tpu.memory_space<vmem>>) attributes {dimension_semantics = [#tpu.dimension_semantics<parallel>], iteration_bounds = array<i64: 1>, scalar_prefetch = 0 : i64, scratch_operands = 0 : i64, tpu.core_type = #tpu.core_type<tc>, window_params = [{transform_indices = @transform_0, window_bounds = array<i64: 16, 32>}, {pipeline_mode = #tpu.pipeline_mode<synchronous>, transform_indices = @transform_1, window_bounds = array<i64: 32, 8>}, {transform_indices = @transform_2, window_bounds = array<i64: 16, 8>}]} {
    %c0 = arith.constant 0 : index
    %c0_0 = arith.constant 0 : index
    %0 = vector.load %arg1[%c0, %c0_0] : memref<16x32xf32, #tpu.memory_space<vmem>>, vector<16x32xf32>
    %c0_1 = arith.constant 0 : index
    %c0_2 = arith.constant 0 : index
    %1 = vector.load %arg2[%c0_1, %c0_2] : memref<32x8xf32, #tpu.memory_space<vmem>>, vector<32x8xf32>
    %cst = arith.constant dense<0.000000e+00> : vector<16x8xf32>
    %2 = tpu.matmul %0, %1, %cst {dimension_numbers = #tpu.dot_dimension_numbers<[1], [0], [0], [1], [0, 0, 1, 1], [], []>} : vector<16x32xf32>, vector<32x8xf32>, vector<16x8xf32> -> vector<16x8xf32>
    %cst_3 = arith.constant dense<0xFF800000> : vector<16xf32>
    %3 = vector.multi_reduction <maximumf>, %2, %cst_3 [1] : vector<16x8xf32> to vector<16xf32>
    %4 = vector.shape_cast %3 : vector<16xf32> to vector<16x1xf32>
    %5 = vector.broadcast %4 : vector<16x1xf32> to vector<16x8xf32>
    %6 = arith.subf %2, %5 : vector<16x8xf32>
    %7 = math.exp %6 : vector<16x8xf32>
    %cst_4 = arith.constant dense<0.000000e+00> : vector<16xf32>
    %8 = vector.multi_reduction <add>, %7, %cst_4 [1] : vector<16x8xf32> to vector<16xf32>
    %9 = vector.shape_cast %8 : vector<16xf32> to vector<16x1xf32>
    %10 = vector.broadcast %9 : vector<16x1xf32> to vector<16x8xf32>
    %11 = arith.divf %7, %10 : vector<16x8xf32>
    %c0_5 = arith.constant 0 : index
    %c0_6 = arith.constant 0 : index
    %12 = vector.load %arg3[%c0_5, %c0_6] : memref<16x8xf32, #tpu.memory_space<vmem>>, vector<16x8xf32>
    tpu.vector_store %arg3[%c0_5, %c0_6], %11 {strides = array<i32>} : memref<16x8xf32, #tpu.memory_space<vmem>>, vector<16x8xf32>,
    return
  }
  func.func @transform_0(%arg0: i32) -> (i32, i32) {
    %c0_i32 = arith.constant 0 : i32
    %c0_i32_0 = arith.constant 0 : i32
    return %arg0, %c0_i32 : i32, i32
  }
  func.func @transform_1(%arg0: i32) -> (i32, i32) {
    %c0_i32 = arith.constant 0 : i32
    %c0_i32_0 = arith.constant 0 : i32
    %c0_i32_1 = arith.constant 0 : i32
    return %c0_i32, %c0_i32_0 : i32, i32
  }
  func.func @transform_2(%arg0: i32) -> (i32, i32) {
    %c0_i32 = arith.constant 0 : i32
    %c0_i32_0 = arith.constant 0 : i32
    return %arg0, %c0_i32 : i32, i32
  }
}

module attributes {stable_mosaic.version = 11 : i64} {
  func.func @_moe_expert_kernel(%arg0: i32, %arg1: i32, %arg2: i32, %arg3: memref<1x8xi32, #tpu.memory_space<smem>>, %arg4: memref<16x32xbf16, #tpu.memory_space<vmem>>, %arg5: memref<1x32x64xbf16, #tpu.memory_space<vmem>>, %arg6: memref<1x64x32xbf16, #tpu.memory_space<vmem>>, %arg7: memref<1x16x1xf32, #tpu.memory_space<vmem>>, %arg8: memref<16x32xf32, #tpu.memory_space<vmem>>, %arg9: memref<16x32xf32, #tpu.memory_space<vmem>>) attributes {dimension_semantics = [#tpu.dimension_semantics<parallel>, #tpu.dimension_semantics<arbitrary>, #tpu.dimension_semantics<arbitrary>], iteration_bounds = array<i64: 1, 8, 1>, scalar_prefetch = 1 : i64, scratch_operands = 1 : i64, tpu.core_type = #tpu.core_type<tc>, window_params = [{transform_indices = @transform_0, window_bounds = array<i64: 16, 32>}, {transform_indices = @transform_1, window_bounds = array<i64: 1, 32, 64>}, {transform_indices = @transform_2, window_bounds = array<i64: 1, 64, 32>}, {transform_indices = @transform_3, window_bounds = array<i64: 1, 16, 1>}, {transform_indices = @transform_4, window_bounds = array<i64: 16, 32>}]} {
    %c0_i32 = arith.constant 0 : i32
    %0 = arith.cmpi eq, %arg1, %c0_i32 : i32
    %c0_i32_0 = arith.constant 0 : i32
    %1 = arith.cmpi eq, %arg2, %c0_i32_0 : i32
    %2 = arith.andi %0, %1 : i1
    %3 = arith.extui %2 : i1 to i32
    %c0_i32_1 = arith.constant 0 : i32
    %4 = arith.cmpi ne, %3, %c0_i32_1 : i32
    scf.if %4 {
      %cst = arith.constant 0.000000e+00 : f32
      %16 = vector.broadcast %cst : f32 to vector<16x32xf32>
      %c0 = arith.constant 0 : index
      %c0_6 = arith.constant 0 : index
      %17 = vector.load %arg9[%c0, %c0_6] : memref<16x32xf32, #tpu.memory_space<vmem>>, vector<16x32xf32>
      tpu.vector_store %arg9[%c0, %c0_6], %16 {strides = array<i32>} : memref<16x32xf32, #tpu.memory_space<vmem>>, vector<16x32xf32>,
    } else {
    }
    %5 = arith.index_cast %arg0 : i32 to index
    %6 = arith.index_cast %arg1 : i32 to index
    %7 = memref.load %arg3[%5, %6] : memref<1x8xi32, #tpu.memory_space<smem>>
    %c0_i32_2 = arith.constant 0 : i32
    %8 = arith.cmpi ne, %7, %c0_i32_2 : i32
    %9 = arith.extui %8 : i1 to i32
    %c0_i32_3 = arith.constant 0 : i32
    %10 = arith.cmpi ne, %9, %c0_i32_3 : i32
    scf.if %10 {
      %c0 = arith.constant 0 : index
      %c0_6 = arith.constant 0 : index
      %16 = vector.load %arg4[%c0, %c0_6] : memref<16x32xbf16, #tpu.memory_space<vmem>>, vector<16x32xbf16>
      %c0_7 = arith.constant 0 : index
      %c0_8 = arith.constant 0 : index
      %c0_9 = arith.constant 0 : index
      %17 = vector.load %arg5[%c0_7, %c0_8, %c0_9] : memref<1x32x64xbf16, #tpu.memory_space<vmem>>, vector<1x32x64xbf16>
      %18 = vector.shape_cast %17 : vector<1x32x64xbf16> to vector<32x64xbf16>
      %cst = arith.constant dense<0.000000e+00> : vector<16x64xf32>
      %19 = tpu.matmul %16, %18, %cst {dimension_numbers = #tpu.dot_dimension_numbers<[1], [0], [0], [1], [0, 0, 1, 1], [], []>} : vector<16x32xbf16>, vector<32x64xbf16>, vector<16x64xf32> -> vector<16x64xf32>
      %20 = arith.mulf %19, %19 : vector<16x64xf32>
      %21 = arith.mulf %19, %20 : vector<16x64xf32>
      %cst_10 = arith.constant 4.471500e-02 : f32
      %22 = vector.broadcast %cst_10 : f32 to vector<16x64xf32>
      %23 = arith.mulf %22, %21 : vector<16x64xf32>
      %24 = arith.addf %19, %23 : vector<16x64xf32>
      %cst_11 = arith.constant 0.797884583 : f32
      %25 = vector.broadcast %cst_11 : f32 to vector<16x64xf32>
      %26 = arith.mulf %25, %24 : vector<16x64xf32>
      %27 = math.tanh %26 : vector<16x64xf32>
      %cst_12 = arith.constant 1.000000e+00 : f32
      %28 = vector.broadcast %cst_12 : f32 to vector<16x64xf32>
      %29 = arith.addf %28, %27 : vector<16x64xf32>
      %cst_13 = arith.constant 5.000000e-01 : f32
      %30 = vector.broadcast %cst_13 : f32 to vector<16x64xf32>
      %31 = arith.mulf %30, %29 : vector<16x64xf32>
      %32 = arith.mulf %19, %31 : vector<16x64xf32>
      %33 = arith.truncf %32 : vector<16x64xf32> to vector<16x64xbf16>
      %c0_14 = arith.constant 0 : index
      %c0_15 = arith.constant 0 : index
      %c0_16 = arith.constant 0 : index
      %34 = vector.load %arg6[%c0_14, %c0_15, %c0_16] : memref<1x64x32xbf16, #tpu.memory_space<vmem>>, vector<1x64x32xbf16>
      %35 = vector.shape_cast %34 : vector<1x64x32xbf16> to vector<64x32xbf16>
      %cst_17 = arith.constant dense<0.000000e+00> : vector<16x32xf32>
      %36 = tpu.matmul %33, %35, %cst_17 {dimension_numbers = #tpu.dot_dimension_numbers<[1], [0], [0], [1], [0, 0, 1, 1], [], []>} : vector<16x64xbf16>, vector<64x32xbf16>, vector<16x32xf32> -> vector<16x32xf32>
      %c0_18 = arith.constant 0 : index
      %c0_19 = arith.constant 0 : index
      %37 = vector.load %arg9[%c0_18, %c0_19] : memref<16x32xf32, #tpu.memory_space<vmem>>, vector<16x32xf32>
      %c0_20 = arith.constant 0 : index
      %c0_21 = arith.constant 0 : index
      %c0_22 = arith.constant 0 : index
      %38 = vector.load %arg7[%c0_20, %c0_21, %c0_22] : memref<1x16x1xf32, #tpu.memory_space<vmem>>, vector<1x16x1xf32>
      %39 = vector.shape_cast %38 : vector<1x16x1xf32> to vector<16x1xf32>
      %40 = vector.broadcast %39 : vector<16x1xf32> to vector<16x32xf32>
      %41 = arith.mulf %40, %36 : vector<16x32xf32>
      %42 = arith.addf %37, %41 : vector<16x32xf32>
      %c0_23 = arith.constant 0 : index
      %c0_24 = arith.constant 0 : index
      %43 = vector.load %arg9[%c0_23, %c0_24] : memref<16x32xf32, #tpu.memory_space<vmem>>, vector<16x32xf32>
      tpu.vector_store %arg9[%c0_23, %c0_24], %42 {strides = array<i32>} : memref<16x32xf32, #tpu.memory_space<vmem>>, vector<16x32xf32>,
    } else {
    }
    %c7_i32 = arith.constant 7 : i32
    %11 = arith.cmpi eq, %arg1, %c7_i32 : i32
    %c0_i32_4 = arith.constant 0 : i32
    %12 = arith.cmpi eq, %arg2, %c0_i32_4 : i32
    %13 = arith.andi %11, %12 : i1
    %14 = arith.extui %13 : i1 to i32
    %c0_i32_5 = arith.constant 0 : i32
    %15 = arith.cmpi ne, %14, %c0_i32_5 : i32
    scf.if %15 {
      %c0 = arith.constant 0 : index
      %c0_6 = arith.constant 0 : index
      %16 = vector.load %arg9[%c0, %c0_6] : memref<16x32xf32, #tpu.memory_space<vmem>>, vector<16x32xf32>
      %c0_7 = arith.constant 0 : index
      %c0_8 = arith.constant 0 : index
      %17 = vector.load %arg8[%c0_7, %c0_8] : memref<16x32xf32, #tpu.memory_space<vmem>>, vector<16x32xf32>
      tpu.vector_store %arg8[%c0_7, %c0_8], %16 {strides = array<i32>} : memref<16x32xf32, #tpu.memory_space<vmem>>, vector<16x32xf32>,
    } else {
    }
    return
  }
  func.func @transform_0(%arg0: i32, %arg1: i32, %arg2: i32, %arg3: memref<1x8xi32, #tpu.memory_space<smem>>) -> (i32, i32) {
    %c0_i32 = arith.constant 0 : i32
    %c0_i32_0 = arith.constant 0 : i32
    return %arg0, %c0_i32 : i32, i32
  }
  func.func @transform_1(%arg0: i32, %arg1: i32, %arg2: i32, %arg3: memref<1x8xi32, #tpu.memory_space<smem>>) -> (i32, i32, i32) {
    %c0_i32 = arith.constant 0 : i32
    %c0_i32_0 = arith.constant 0 : i32
    return %arg1, %c0_i32, %arg2 : i32, i32, i32
  }
  func.func @transform_2(%arg0: i32, %arg1: i32, %arg2: i32, %arg3: memref<1x8xi32, #tpu.memory_space<smem>>) -> (i32, i32, i32) {
    %c0_i32 = arith.constant 0 : i32
    %c0_i32_0 = arith.constant 0 : i32
    return %arg1, %arg2, %c0_i32 : i32, i32, i32
  }
  func.func @transform_3(%arg0: i32, %arg1: i32, %arg2: i32, %arg3: memref<1x8xi32, #tpu.memory_space<smem>>) -> (i32, i32, i32) {
    %c0_i32 = arith.constant 0 : i32
    %c0_i32_0 = arith.constant 0 : i32
    return %arg1, %arg0, %c0_i32 : i32, i32, i32
  }
  func.func @transform_4(%arg0: i32, %arg1: i32, %arg2: i32, %arg3: memref<1x8xi32, #tpu.memory_space<smem>>) -> (i32, i32) {
    %c0_i32 = arith.constant 0 : i32
    %c0_i32_0 = arith.constant 0 : i32
    return %arg0, %c0_i32 : i32, i32
  }
}

</mosaic_0001>

<bundles_post_ra>
// kernel: parallel_dropless_moe_forward.2
= control target key start
LH: loop header
LB: loop body
LE: loop exit
PB: predicated region body
PF: predicated region fallthrough
CT: control target
= control target key end

     0   :  { %vm17_vm0 = vcmask 261120   ;;  %vm99_vm1 = vcmask 64512   ;;  %s208_s1 = inlined_call_operand.vmem [shape: f32[32,8], index: 1, kind: input, shape index: {}]   ;;  %s209_s0 = inlined_call_operand.vmem [shape: f32[16,32], index: 0, kind: input, shape index: {}]   ;;  %s210_s2 = inlined_call_operand.vmem [shape: f32[16,8], index: 2, kind: output, shape index: {}]  }
   0x1   :  { %v13_v0 = vld [vmem:[%s208_s1] sm:$0xff]  ;;  %v14_v1 = vld [vmem:[%s208_s1 + $0x8] sm:$0xff]  ;;  %v15_v2 = vld [vmem:[%s208_s1 + $0x10] sm:$0xff] }
   0x2   :  { %v147_v3 = vpack.c.bf16 %v14_v1, %v13_v0  ;;  %v16_v4 = vld [vmem:[%s208_s1 + $0x18] sm:$0xff]  ;;  %v11_v5 = vld [vmem:[%s209_s0] sm:$0xff]  ;;  %v12_v7 = vld [vmem:[%s209_s0 + $0x8] sm:$0xff] }
   0x3   :  { %v151_v6 = vpack.c.bf16 %v16_v4, %v15_v2  ;;  %144 = vmatprep.mubr.msk.f32.mxu0 %vm17_vm0, %v11_v5 }
   0x4   :  { %148 = vmatprep.subr.bf16.mxu0 %v147_v3 }
   0x5   :  { %150 = vmatpush3.bf16.msra.mxu0 %v147_v3 }
   0x6   :  { %152 = vmatprep.subr.bf16.mxu0 %v151_v6 }
   0x9   :  { %154 = vmatpush3.bf16.msra.mxu0 %v151_v6 }
   0xc   :  { %145 = vmatmul.mubr.msk.f32.vlgmr.msra.gmra.mrb[0].mxu0 %vm17_vm0, %v12_v7 }
  0xdf   :  { %v146_v8 = vpop.f32.mrb[0].mxu0 }
  0xe0   :  { %v90_v9 = vpop.f32.mrb[1].mxu0  ;;  %v103_v11 = vsel %vm99_vm1, %v146_v8, -inf }
  0xe1   :  { %v100_v10 = vsel %vm99_vm1, %v90_v9, -inf }
  0xe2   :  { %101 = vmax.xlane.f32.xlu0 %v100_v10 }
  0xe6   :  { %104 = vmax.xlane.f32.xlu0 %v103_v11 }
 0x16f   :  { %v102_v12 = vpop.xlane.xlu0 %101 }
 0x170   :  { %v106_v13 = vsub.f32 %v90_v9, %v102_v12 }
 0x172   :  { %v108_v14 = vmul.f32 1.442695, %v106_v13 }
 0x173   :  { %v105_v15 = vpop.xlane.xlu0 %104 }
 0x174   :  { %155 = vpow2.f32 %v108_v14  ;;  %v107_v16 = vsub.f32 %v146_v8, %v105_v15 }
 0x176   :  { %v110_v17 = vmul.f32 1.442695, %v107_v16 }
 0x178   :  { %157 = vpow2.f32 %v110_v17 }
 0x17e   :  { %v156_v18 = vpop.eup %155 }
 0x17f   :  { %v112_v19 = vsel %vm99_vm1, %v156_v18, 0.0 }
 0x180   :  { %113 = vadd.xlane.f32.xlu1 %v112_v19 }
 0x182   :  { %v158_v20 = vpop.eup %157 }
 0x183   :  { %v115_v21 = vsel %vm99_vm1, %v158_v20, 0.0 }
 0x184   :  { %116 = vadd.xlane.f32.xlu1 %v115_v21 }
 0x20d   :  { %v114_v22 = vpop.xlane.xlu1 %113 }
 0x20e   :  { %159 = vrcp.f32 %v114_v22 }
 0x211   :  { %v117_v23 = vpop.xlane.xlu1 %116 }
 0x212   :  { %161 = vrcp.f32 %v117_v23 }
 0x218   :  { %v160_v24 = vpop.eup %159 }
 0x219   :  { %v119_v25 = vmul.f32 %v160_v24, %v156_v18 }
 0x21b   :  { %122 = vst.msk [vmem:[%s210_s2] sm:$0xff] %vm99_vm1, %v119_v25 }
 0x21c   :  { %v162_v26 = vpop.eup %161 }
 0x21d   :  { %v121_v27 = vmul.f32 %v162_v26, %v158_v20 }
 0x21f   :  { %123 = vst.msk [vmem:[%s210_s2 + $0x8] sm:$0xff] %vm99_vm1, %v121_v27 }

// kernel: parallel_dropless_moe_forward.3
= control target key start
LH: loop header
LB: loop body
LE: loop exit
PB: predicated region body
PF: predicated region fallthrough
CT: control target
= control target key end

     0   :  { %s968_s0 = inlined_call_operand.vmem [shape: s32[1,8], index: 0, kind: input, shape index: {}]   ;;  %s969_s1 = inlined_call_operand.vmem [shape: bf16[16,32], index: 1, kind: input, shape index: {}]   ;;  %s970_s2 = inlined_call_operand.vmem [shape: bf16[8,32,64], index: 2, kind: input, shape index: {}]   ;;  %s971_s3 = inlined_call_operand.vmem [shape: bf16[8,64,32], index: 3, kind: input, shape index: {}]   ;;  %s972_s4 = inlined_call_operand.vmem [shape: f32[8,16,1], index: 4, kind: input, shape index: {}]   ;;  %s973_s5 = inlined_call_operand.hbm [shape: f32[16,32], index: 5, kind: output, shape index: {}]  }
   0x1   :  { %s10_s20 = sshll.u32 %s968_s0, 4  ;;  %s11_s20 = int_to_ptr.vmem [resolvable:$true] %s10_s20 }
   0x2   :  { %s770_s21 = scalar_lea.vmem %s11_s20, 16  ;;  %p775_p1 = scmp.lt.s32.totalorder %s11_s20, %s11_s20 }
   0x3   :  { %p771_p0 = scmp.ne.s32.totalorder %s11_s20, %s770_s21  ;;  %p776_p2 = scmp.lt.s32.totalorder %s770_s21, %s770_s21 }
   0x5   :  { %p777_p3 = por %p776_p2, %p775_p1 }
   0x7   :  { %p778_p4 = pnand %p777_p3, %p771_p0 }
   0x9   :  { %781 = shalt.err (!%p778_p4)  }
   0xa   :  { %s838_s22 = smov [#allocation4]  }
   0xb   :  { %13 = dma.vmem_to_smem %s11_s20, 16, %s838_s22, [#allocation3] }
   0xc   :  { %820 = dma.done.wait [#allocation3], 16 }
   0xd   :  { %821 = vsyncadd [#allocation3], 4294967280 }
   0xe   :  { %15 = sfence }
   0xf   :  { %16 = vsyncpa [#allocation6], 0  ;;  %s879_s23 = smov 0   ;;  %s881_s24 = smov 0  }
  0x10   :  { %s883_s25 = smov 0  }
  0x11 LB: > { %s659_s0 = sadd.s32 4294967295, %s836_s25   ;;  %s37_s26 = sadd.s32 1, %s832_s24  ;;  %s836_s25 = sphi %s883_s25, %s22_s25   ;;  %s832_s24 = sphi %s881_s24, %s976_s24   ;;  %s828_s23 = sphi %s879_s23, %s975_s23  }
  0x12   : > { %p39_p5 = scmp.ge.s32.totalorder %s37_s26, 8  ;;  %p663_p6 = scmp.ge.s32.totalorder %s836_s25, 1 }
  0x13   : > { %p239_p7 = scmp.lt.s32.totalorder %s836_s25, 9 }
  0x14   : > { %s978_s26 = smov (%p39_p5, %s37_s26), 0 }
  0x15   : > { %p240_p8 = pnand %p663_p6, %p239_p7 }
  0x16   : > { %p292_p9 = scmp.lt.s32.totalorder (!%p240_p8), %s828_s23, 7  ;;  %p322_p10 = scmp.eq.s32.totalorder (!%p240_p8), %s828_s23, 0 }
  0x17   : > { %243 = sbr.rel (%p240_p8) target bundleno = 554 (0x22a), region = 36 }
  0x1e   : > { %s293_s27 = scalar_select %p292_p9, %s828_s23, 7 }
  0x1f   : > { %327 = sbr.rel (!%p322_p10) target bundleno = 38 (0x26), region = 40  ;;  %vm328_vm0 = vcmask (%p322_p10), 261120   ;;  %v839_v0 = vmov (%p322_p10), 0.0  }
  0x20   : > { %s687_s28 = sshll.u32 %s293_s27, 4  ;;  %s688_s29 = sshll.u32 %s293_s27, 5  ;;  %329 = vst.msk [vmem:[#allocation2] sm:$0xff] (%p322_p10), %vm328_vm0, %v839_v0  ;;  %330 = vst.msk [vmem:[#allocation2 + $0x8] sm:$0xff] (%p322_p10), %vm328_vm0, %v839_v0 }
  0x21   : > { %s299_s7 = scalar_lea.vmem %s970_s2, %s687_s28  ;;  %s909_s10 = scalar_lea.vmem %s971_s3, %s688_s29 }
  0x22   : > { %s914_s13 = scalar_lea.vmem %s972_s4, %s687_s28 }
  0x26 PF: > { %s331_s14 = sshra.s32 %s828_s23, 7  ;;  %s336_s15 = sand.u32 127, %s828_s23 }
  0x27   : > { %s671_s16 = sshll.u32 %s331_s14, 7 }
  0x28   : > { %s337_s17 = sadd.s32 %s671_s16, %s336_s15 }
  0x29   : > { %s338_s18 = sld [smem:[#allocation4 + %s337_s17]] }
  0x2f   : > { %p672_p11 = scmp.eq.s32.totalorder %s338_s18, 0 }
  0x30   : > { %v759_v1 = vld [vmem:[%s299_s7] sm:$0xff] (!%p672_p11)   ;;  %v840_v2 = vmov (!%p672_p11), 0.0   ;;  %v760_v3 = vld [vmem:[%s299_s7 + $0x8] sm:$0xff] (!%p672_p11)   ;;  %vm841_vm1 = vmmov (!%p672_p11), 0   ;;  %vm366_vm2 = vcmask (!%p672_p11), 261120   ;;  %v764_v7 = vld [vmem:[%s909_s10 + $0x10] sm:$0xff] (!%p672_p11)  }
  0x31   : > { %342 = sbr.rel (%p672_p11) target bundleno = 519 (0x207), region = 44  ;;  %700 = vmatprep.subr.bf16.mxu0 (!%p672_p11), %v840_v2  ;;  %708 = vmatprep.subr.bf16.mxu1 (!%p672_p11), %v840_v2  ;;  %v761_v4 = vld [vmem:[%s969_s1] sm:$0xff] (!%p672_p11)   ;;  %v763_v6 = vld [vmem:[%s909_s10 + $0x8] sm:$0xff] (!%p672_p11)   ;;  %v765_v8 = vld [vmem:[%s909_s10 + $0x18] sm:$0xff] (!%p672_p11)   ;;  %v842_v10 = vmov (!%p672_p11), 0   ;;  %vm462_vm3 = vcmask (!%p672_p11), 523264  }
  0x32   : > { %701 = vmatpush3.bf16.msra.mxu0 (!%p672_p11), %v759_v1  ;;  %704 = vmatprep.mubr.msk.bf16.mxu0 (!%p672_p11), %vm841_vm1, %v840_v2  ;;  %v762_v5 = vld [vmem:[%s909_s10] sm:$0xff] (!%p672_p11)   ;;  %v510_v11 = vld [vmem:[%s914_s13 + $0x8] sm:$0xff] (!%p672_p11) }
  0x33   : > { %702 = vmatprep.subr.bf16.mxu0 (!%p672_p11), %v840_v2  ;;  %716 = vmatprep.mubr.msk.bf16.mxu1 (!%p672_p11), %vm841_vm1, %v840_v2  ;;  %v509_v9 = vld [vmem:[%s914_s13] sm:$0xff] (!%p672_p11)  ;;  %v508_v42 = vld [vmem:[#allocation2 + $0x8] sm:$0xff] (!%p672_p11) }
  0x34   : > { %709 = vmatpush3.bf16.msra.mxu1 (!%p672_p11), %v762_v5  ;;  %758 = vset.pattern.permute.xlu0 (!%p672_p11), %v842_v10  ;;  %v507_v37 = vld [vmem:[#allocation2] sm:$0xff] (!%p672_p11) }
  0x35   : > { %710 = vmatprep.subr.bf16.mxu1 (!%p672_p11), %v840_v2  ;;  %513 = vperm.xlu0 (!%p672_p11), %758, %v509_v9  }
  0x36   : > { %703 = vmatpush3.bf16.msra.mxu0 (!%p672_p11), %v760_v3 }
  0x38   : > { %711 = vmatpush3.bf16.msra.mxu1 %v763_v6 }
  0x39   : > { %705 = vmatmul.mubr.msk.bf16.vlgmr.msra.gmra.mrb[0].mxu0 %vm366_vm2, %v761_v4  ;;  %712 = vmatprep.subr.bf16.mxu1 %v840_v2 }
  0x3a   : > { %518 = vperm.xlu0 %758, %v510_v11  }
  0x3c   : > { %713 = vmatpush3.bf16.msra.mxu1 %v764_v7 }
  0x3d   : > { %714 = vmatprep.subr.bf16.mxu1 %v840_v2 }
  0x40   : > { %715 = vmatpush3.bf16.msra.mxu1 %v765_v8 }
  0xb4   : > { %v514_v35 = vpop.permute.xlu0 %513 }
  0xb9   : > { %v519_v40 = vpop.permute.xlu0 %518 }
 0x10c   : > { %v404_v12 = vpop.f32.mrb[0].mxu0 }
 0x10d   : > { %v411_v13 = vmul.f32 %v404_v12, %v404_v12  ;;  %v706_v14 = vpop.f32.mrb[1].mxu0 }
 0x10e   : > { %v407_v15 = vpop.f32.mrb[2].mxu0 }
 0x10f   : > { %v413_v16 = vmul.f32 %v411_v13, %v404_v12  ;;  %v412_v17 = vmul.f32 %v407_v15, %v407_v15  ;;  %v707_v18 = vpop.f32.mrb[3].mxu0 }
 0x111   : > { %v415_v19 = vmul.f32 0.044715, %v413_v16  ;;  %v414_v20 = vmul.f32 %v412_v17, %v407_v15 }
 0x113   : > { %v417_v21 = vadd.f32 %v415_v19, %v404_v12  ;;  %v416_v22 = vmul.f32 0.044715, %v414_v20 }
 0x115   : > { %v419_v23 = vmul.f32 0.7978846, %v417_v21  ;;  %v418_v24 = vadd.f32 %v416_v22, %v407_v15 }
 0x117   : > { %766 = vtanh.f32 %v419_v23  ;;  %v420_v25 = vmul.f32 0.7978846, %v418_v24 }
 0x119   : > { %768 = vtanh.f32 %v420_v25 }
 0x121   : > { %v767_v26 = vpop.eup %766 }
 0x122   : > { %v423_v27 = vadd.f32 1.0, %v767_v26 }
 0x123   : > { %v769_v28 = vpop.eup %768 }
 0x124   : > { %v425_v29 = vmul.f32 0.5, %v423_v27  ;;  %v424_v30 = vadd.f32 1.0, %v769_v28 }
 0x126   : > { %v426_v31 = vmul.f32 0.5, %v424_v30  ;;  %v427_v32 = vmul.f32 %v425_v29, %v404_v12 }
 0x128   : > { %v428_v33 = vmul.f32 %v426_v31, %v407_v15 }
 0x12a   : > { %v429_v34 = vpack.c.bf16 %v428_v33, %v427_v32 }
 0x12c   : > { %717 = vmatmul.mubr.msk.bf16.vlgmr.msra.gmra.mrb[0].mxu1 %vm462_vm3, %v429_v34 }
 0x1ff   : > { %v500_v36 = vpop.f32.mrb[0].mxu1 }
 0x200   : > { %v521_v38 = vmul.f32 %v514_v35, %v500_v36  ;;  %v718_v39 = vpop.f32.mrb[1].mxu1 }
 0x201   : > { %v503_v41 = vpop.f32.mrb[2].mxu1 }
 0x202   : > { %v523_v43 = vadd.f32 %v521_v38, %v507_v37  ;;  %v522_v44 = vmul.f32 %v519_v40, %v503_v41  ;;  %v719_v45 = vpop.f32.mrb[3].mxu1 }
 0x204   : > { %525 = vst.msk [vmem:[#allocation2] sm:$0xff] %vm366_vm2, %v523_v43  ;;  %v524_v46 = vadd.f32 %v522_v44, %v508_v42 }
 0x206   : > { %526 = vst.msk [vmem:[#allocation2 + $0x8] sm:$0xff] %vm366_vm2, %v524_v46 }
 0x207 PF: > { %p527_p12 = scmp.eq.s32.totalorder %s828_s23, 7 }
 0x208   : > { %vm534_vm4 = vcmask (%p527_p12), 261120  }
 0x209   : > { %531 = sbr.rel (!%p527_p12) target bundleno = 528 (0x210), region = 48 }
 0x20b   : > { %v532_v47 = vld [vmem:[#allocation2] sm:$0xff] (%p527_p12) }
 0x20c   : > { %535 = vst.msk [vmem:[#allocation5] sm:$0xff] (%p527_p12), %vm534_vm4, %v532_v47 }
 0x20d   : > { %v533_v48 = vld [vmem:[#allocation2 + $0x8] sm:$0xff] (%p527_p12) }
 0x20e   : > { %536 = vst.msk [vmem:[#allocation5 + $0x8] sm:$0xff] (%p527_p12), %vm534_vm4, %v533_v48 }
 0x210 PF: > { %p933_p13 = scmp.eq.s32.totalorder %s659_s0, 7  ;;  %s843_s22 = smov [#allocation5]  }
 0x211   : > { %s546_s27 = sshll.u32 %s843_s22, 4  ;;  %s547_s27 = int_to_ptr.vmem [resolvable:$true] %s546_s27 }
 0x212   : > { %s782_s28 = scalar_lea.vmem %s547_s27, 256  ;;  %p789_p3 = scmp.lt.s32.totalorder %s547_s27, %s547_s27 }
 0x213   : > { %p783_p0 = scmp.ne.s32.totalorder %s547_s27, %s782_s28  ;;  %p790_p4 = scmp.lt.s32.totalorder %s782_s28, %s782_s28 }
 0x215   : > { %p784_p1 = pnand %p783_p0, %p933_p13  ;;  %p791_p5 = por %p790_p4, %p789_p3 }
 0x217   : > { %p785_p2 = pneg %p784_p1 }
 0x219   : > { %p792_p6 = pnand %p791_p5, %p785_p2 }
 0x21b   : > { %795 = shalt.err (!%p792_p6)
}
 0x21c   : > { %s796_s0 = scalar_lea.hbm %s973_s5, 256 }
 0x21d   : > { %p797_p7 = scmp.ne.s32.totalorder %s973_s5, %s796_s0  ;;  %p802_p10 = scmp.lt.u32.totalorder %s796_s0, %s973_s5 }
 0x21f   : > { %p798_p8 = pnand %p797_p7, %p933_p13 }
 0x221   : > { %p799_p9 = pneg %p798_p8 }
 0x223   : > { %p804_p11 = pnand %p802_p10, %p799_p9 }
 0x225   : > { %807 = shalt.err (!%p804_p11)
}
 0x226   : > { %s844_s9 = smov 128   ;;  %s845_s10 = smov 8  }
 0x227   : > { %721 = dma.vmem_to_hbm [thread:$0]  (%p933_p13), %s547_s27, 256, %s973_s5, [#allocation6], %s844_s9, %s844_s9, %s845_s10  }
 0x228   : > { %823 = dma.done.wait (%p933_p13), [#allocation6], 256  }
 0x229   : > { %825 = vsyncadd (%p933_p13), [#allocation6], 4294967040 }
 0x22a PF: > { %s22_s25 = sadd.s32 1, %s836_s25   ;;  %s975_s23 = smov %s832_s24 }
 0x22b   : > { %p19_p12 = scmp.ge.s32.totalorder %s22_s25, 10   ;;  %s976_s24 = smov %s978_s26 }
 0x22d   :  { %21 = sbr.rel (!%p19_p12) target bundleno = 17 (0x11), region = 85 }
 0x234   :  { %562 = vsyncpa [#allocation6], 1 }
 0x235   :  { %564 = vsyncpa [#allocation6 + $0x1], 1 }

</bundles_post_ra>
